<compile_context>
chip_gen: v5e
topology: v5e:2x2
jax: 0.10.0
libtpu: 0.0.40
codegen_flags: <defaults>
</compile_context>

<pallas_src>
import functools

import jax
import jax.numpy as jnp
from jax.experimental import pallas as pl
from jax.experimental.pallas import tpu as pltpu  # noqa: F401  (kept for TPU-specific knobs)


# ----------------------------- Pallas kernels ------------------------------

def matmul_bias_kernel(x_ref, w_ref, b_ref, o_ref):
    """o = x @ w + b.  Used for the hoisted per-layer input projection."""
    o_ref[...] = (jnp.dot(x_ref[...], w_ref[...],
                          preferred_element_type=jnp.float32)
                  + b_ref[...]).astype(o_ref.dtype)


def _lstm_recurrence(gx_ref, whh_ref, h_ref, c_ref, y_ref=None):
    """Serial LSTM recurrence over T timesteps.

    gx_ref : (T, B, 4H) precomputed x_t @ W_ih^T + (b_ih + b_hh), time-major.
    whh_ref: (H, 4H)    recurrent weights (pre-transposed).
    h_ref/c_ref: (B, H) output refs, also used as the running state (VMEM-resident).
    y_ref  : optional (T, B, H) hidden-sequence output (input to the next layer).
    """
    T = gx_ref.shape[0]
    H = whh_ref.shape[0]

    # PyTorch module zeroes the initial states on every forward call.
    h_ref[...] = jnp.zeros_like(h_ref)
    c_ref[...] = jnp.zeros_like(c_ref)

    whh = whh_ref[...]  # hoist weight load out of the loop (loop-invariant)

    @pl.loop(0, T)
    def _step(t):
        h_prev = h_ref[...]
        c_prev = c_ref[...]
        # Only the (B, H) x (H, 4H) matmul remains on the serial critical path.
        gates = gx_ref[t] + jnp.dot(h_prev, whh,
                                    preferred_element_type=jnp.float32)  # (B, 4H)

        # Whole-vreg activations over the full (B, 4H) tile, then per-gate slices.
        sig = jax.nn.sigmoid(gates)
        tnh = jnp.tanh(gates)
        i_g = sig[:, 0 * H:1 * H]
        f_g = sig[:, 1 * H:2 * H]
        g_g = tnh[:, 2 * H:3 * H]
        o_g = sig[:, 3 * H:4 * H]

        c_new = f_g * c_prev + i_g * g_g
        h_new = o_g * jnp.tanh(c_new)

        h_ref[...] = h_new
        c_ref[...] = c_new
        if y_ref is not None:
            y_ref[t] = h_new.astype(y_ref.dtype)


def lstm_layer_kernel(gx_ref, whh_ref, y_ref, h_ref, c_ref):
    """Intermediate LSTM layer: emits the full hidden sequence + final states."""
    _lstm_recurrence(gx_ref, whh_ref, h_ref, c_ref, y_ref=y_ref)


def lstm_last_layer_kernel(gx_ref, whh_ref, wout_ref, bout_ref,
                           out_ref, h_ref, c_ref):
    """Last LSTM layer fused with the output Linear on h_T (== out[:, -1, :])."""
    _lstm_recurrence(gx_ref, whh_ref, h_ref, c_ref, y_ref=None)
    out_ref[...] = (jnp.dot(h_ref[...], wout_ref[...],
                            preferred_element_type=jnp.float32)
                    + bout_ref[...]).astype(out_ref.dtype)


# ------------------------------ Host wrappers -------------------------------

def run_matmul_bias(x, w_t, b):
    """x: (M, K); w_t: (K, N); b: (1, N) -> (M, N)."""
    M, K = x.shape
    N = w_t.shape[1]
    return pl.pallas_call(
        matmul_bias_kernel,
        out_shape=jax.ShapeDtypeStruct((M, N), x.dtype),
        in_specs=[
            pl.BlockSpec((M, K), lambda: (0, 0)),
            pl.BlockSpec((K, N), lambda: (0, 0)),
            pl.BlockSpec((1, N), lambda: (0, 0)),
        ],
        out_specs=pl.BlockSpec((M, N), lambda: (0, 0)),
    )(x, w_t, b)


def run_lstm_layer(gx, whh_t):
    """gx: (T, B, 4H) time-major projected inputs; whh_t: (H, 4H)."""
    T, B, _ = gx.shape
    H = whh_t.shape[0]
    return pl.pallas_call(
        lstm_layer_kernel,
        out_shape=(
            jax.ShapeDtypeStruct((T, B, H), gx.dtype),   # hidden sequence (next layer in)
            jax.ShapeDtypeStruct((B, H), gx.dtype),      # h_T
            jax.ShapeDtypeStruct((B, H), gx.dtype),      # c_T
        ),
        in_specs=[
            pl.BlockSpec((T, B, 4 * H), lambda: (0, 0, 0)),
            pl.BlockSpec((H, 4 * H), lambda: (0, 0)),
        ],
        out_specs=(
            pl.BlockSpec((T, B, H), lambda: (0, 0, 0)),
            pl.BlockSpec((B, H), lambda: (0, 0)),
            pl.BlockSpec((B, H), lambda: (0, 0)),
        ),
    )(gx, whh_t)


def run_lstm_last_layer(gx, whh_t, w_out_t, b_out):
    """Last layer + fused classifier head. Returns (logits, h_T, c_T)."""
    T, B, _ = gx.shape
    H = whh_t.shape[0]
    C = w_out_t.shape[1]
    return pl.pallas_call(
        lstm_last_layer_kernel,
        out_shape=(
            jax.ShapeDtypeStruct((B, C), gx.dtype),      # logits
            jax.ShapeDtypeStruct((B, H), gx.dtype),      # h_T
            jax.ShapeDtypeStruct((B, H), gx.dtype),      # c_T
        ),
        in_specs=[
            pl.BlockSpec((T, B, 4 * H), lambda: (0, 0, 0)),
            pl.BlockSpec((H, 4 * H), lambda: (0, 0)),
            pl.BlockSpec((H, C), lambda: (0, 0)),
            pl.BlockSpec((1, C), lambda: (0, 0)),
        ],
        out_specs=(
            pl.BlockSpec((B, C), lambda: (0, 0)),
            pl.BlockSpec((B, H), lambda: (0, 0)),
            pl.BlockSpec((B, H), lambda: (0, 0)),
        ),
    )(gx, whh_t, w_out_t, b_out)


@functools.partial(jax.jit, static_argnames=("num_layers",))
def lstm_forward(x, hidden_state, cell_state, params, num_layers):
    """Matches LSTM.forward: the passed-in hidden/cell states are ignored
    (the PyTorch module overwrites them with zeros)."""
    del hidden_state, cell_state
    B, T, _ = x.shape
    layer_in = jnp.transpose(x, (1, 0, 2))        # time-major (T, B, D) for the kernels
    hs, cs = [], []
    out = None
    for l in range(num_layers):
        wih_t = params[f"wih_t_{l}"]              # (d_in, 4H)
        whh_t = params[f"whh_t_{l}"]              # (H, 4H)
        b = params[f"b_{l}"]                      # (1, 4H) = b_ih + b_hh
        d_in = wih_t.shape[0]
        H = whh_t.shape[0]

        # Hoisted input projection for the whole sequence: one big MXU matmul.
        gx = run_matmul_bias(layer_in.reshape(T * B, d_in), wih_t, b)
        gx = gx.reshape(T, B, 4 * H)

        if l == num_layers - 1:
            out, h, c = run_lstm_last_layer(gx, whh_t,
                                            params["w_out_t"], params["b_out"])
        else:
            layer_in, h, c = run_lstm_layer(gx, whh_t)
        hs.append(h)
        cs.append(c)
    return out, jnp.stack(hs, axis=0), jnp.stack(cs, axis=0)


# ------------------------- Deterministic param init -------------------------

def init_params(key, input_size, hidden_size, num_layers, num_classes):
    params = {}
    k = 1.0 / jnp.sqrt(hidden_size)
    keys = jax.random.split(key, 4 * num_layers + 2)
    ki = 0
    for l in range(num_layers):
        d_in = input_size if l == 0 else hidden_size
        wih = jax.random.uniform(keys[ki], (4 * hidden_size, d_in),
                                 jnp.float32, -k, k); ki += 1
        whh = jax.random.uniform(keys[ki], (4 * hidden_size, hidden_size),
                                 jnp.float32, -k, k); ki += 1
        bih = jax.random.uniform(keys[ki], (4 * hidden_size,),
                                 jnp.float32, -k, k); ki += 1
        bhh = jax.random.uniform(keys[ki], (4 * hidden_size,),
                                 jnp.float32, -k, k); ki += 1
        params[f"wih_t_{l}"] = wih.T                       # (d_in, 4H)
        params[f"whh_t_{l}"] = whh.T                       # (H, 4H)
        params[f"b_{l}"] = (bih + bhh)[None, :]            # (1, 4H)
    w_out = jax.random.uniform(keys[ki], (num_classes, hidden_size),
                               jnp.float32, -k, k); ki += 1
    b_out = jax.random.uniform(keys[ki], (num_classes,),
                               jnp.float32, -k, k)
    params["w_out_t"] = w_out.T                            # (H, C)
    params["b_out"] = b_out[None, :]                       # (1, C)
    return params


# ------------------------------- Reference ----------------------------------

def reference_forward(x, params, num_layers, hidden_size):
    layer_in = x
    hs, cs = [], []
    for l in range(num_layers):
        B, T, _ = layer_in.shape
        h = jnp.zeros((B, hidden_size), jnp.float32)
        c = jnp.zeros((B, hidden_size), jnp.float32)
        ys = []
        for t in range(T):
            gates = (layer_in[:, t, :] @ params[f"wih_t_{l}"]
                     + h @ params[f"whh_t_{l}"] + params[f"b_{l}"])
            i_g = jax.nn.sigmoid(gates[:, 0 * hidden_size:1 * hidden_size])
            f_g = jax.nn.sigmoid(gates[:, 1 * hidden_size:2 * hidden_size])
            g_g = jnp.tanh(gates[:, 2 * hidden_size:3 * hidden_size])
            o_g = jax.nn.sigmoid(gates[:, 3 * hidden_size:4 * hidden_size])
            c = f_g * c + i_g * g_g
            h = o_g * jnp.tanh(c)
            ys.append(h)
        layer_in = jnp.stack(ys, axis=1)
        hs.append(h)
        cs.append(c)
    out = layer_in[:, -1, :] @ params["w_out_t"] + params["b_out"]
    return out, jnp.stack(hs, 0), jnp.stack(cs, 0)


# --------------------------------- Main --------------------------------------

if __name__ == "__main__":
    B, T = 2, 8
    input_size, hidden_size, num_layers, num_classes = 16, 32, 2, 5

    key = jax.random.PRNGKey(0)
    kx, kp = jax.random.split(key)
    x = jax.random.normal(kx, (B, T, input_size), jnp.float32)
    params = init_params(kp, input_size, hidden_size, num_layers, num_classes)

    # These are ignored by forward (the module re-zeros them), mirrored here.
    h0 = jnp.zeros((num_layers, B, hidden_size), jnp.float32)
    c0 = jnp.zeros((num_layers, B, hidden_size), jnp.float32)

    out, h, c = lstm_forward(x, h0, c0, params, num_layers)
    jax.block_until_ready((out, h, c))

    ref_out, ref_h, ref_c = reference_forward(x, params, num_layers, hidden_size)
    assert out.shape == (B, num_classes)
    assert h.shape == (num_layers, B, hidden_size)
    assert c.shape == (num_layers, B, hidden_size)
    assert jnp.allclose(out, ref_out, atol=1e-4), "logits mismatch"
    assert jnp.allclose(h, ref_h, atol=1e-4), "hidden state mismatch"
    assert jnp.allclose(c, ref_c, atol=1e-4), "cell state mismatch"

    print("KERNEL_OK")
</pallas_src>

<mosaic_0001>
module attributes {stable_mosaic.version = 11 : i64} {
  func.func @matmul_bias_kernel(%arg0: memref<16x32xf32, #tpu.memory_space<vmem>>, %arg1: memref<32x128xf32, #tpu.memory_space<vmem>>, %arg2: memref<1x128xf32, #tpu.memory_space<vmem>>, %arg3: memref<16x128xf32, #tpu.memory_space<vmem>>) attributes {dimension_semantics = [], scalar_prefetch = 0 : i64, scratch_operands = 0 : i64, tpu.core_type = #tpu.core_type<tc>} {
    %c0 = arith.constant 0 : index
    %c0_0 = arith.constant 0 : index
    %0 = vector.load %arg0[%c0, %c0_0] : memref<16x32xf32, #tpu.memory_space<vmem>>, vector<16x32xf32>
    %c0_1 = arith.constant 0 : index
    %c0_2 = arith.constant 0 : index
    %1 = vector.load %arg1[%c0_1, %c0_2] : memref<32x128xf32, #tpu.memory_space<vmem>>, vector<32x128xf32>
    %cst = arith.constant dense<0.000000e+00> : vector<16x128xf32>
    %2 = tpu.matmul %0, %1, %cst {dimension_numbers = #tpu.dot_dimension_numbers<[1], [0], [0], [1], [0, 0, 1, 1], [], []>} : vector<16x32xf32>, vector<32x128xf32>, vector<16x128xf32> -> vector<16x128xf32>
    %c0_3 = arith.constant 0 : index
    %c0_4 = arith.constant 0 : index
    %3 = vector.load %arg2[%c0_3, %c0_4] : memref<1x128xf32, #tpu.memory_space<vmem>>, vector<1x128xf32>
    %4 = vector.broadcast %3 : vector<1x128xf32> to vector<16x128xf32>
    %5 = arith.addf %2, %4 : vector<16x128xf32>
    %c0_5 = arith.constant 0 : index
    %c0_6 = arith.constant 0 : index
    %6 = vector.load %arg3[%c0_5, %c0_6] : memref<16x128xf32, #tpu.memory_space<vmem>>, vector<16x128xf32>
    tpu.vector_store %arg3[%c0_5, %c0_6], %5 {strides = array<i32>} : memref<16x128xf32, #tpu.memory_space<vmem>>, vector<16x128xf32>,
    return
  }
}

module attributes {stable_mosaic.version = 11 : i64} {
  func.func @matmul_bias_kernel(%arg0: memref<16x16xf32, #tpu.memory_space<vmem>>, %arg1: memref<16x128xf32, #tpu.memory_space<vmem>>, %arg2: memref<1x128xf32, #tpu.memory_space<vmem>>, %arg3: memref<16x128xf32, #tpu.memory_space<vmem>>) attributes {dimension_semantics = [], scalar_prefetch = 0 : i64, scratch_operands = 0 : i64, tpu.core_type = #tpu.core_type<tc>} {
    %c0 = arith.constant 0 : index
    %c0_0 = arith.constant 0 : index
    %0 = vector.load %arg0[%c0, %c0_0] : memref<16x16xf32, #tpu.memory_space<vmem>>, vector<16x16xf32>
    %c0_1 = arith.constant 0 : index
    %c0_2 = arith.constant 0 : index
    %1 = vector.load %arg1[%c0_1, %c0_2] : memref<16x128xf32, #tpu.memory_space<vmem>>, vector<16x128xf32>
    %cst = arith.constant dense<0.000000e+00> : vector<16x128xf32>
    %2 = tpu.matmul %0, %1, %cst {dimension_numbers = #tpu.dot_dimension_numbers<[1], [0], [0], [1], [0, 0, 1, 1], [], []>} : vector<16x16xf32>, vector<16x128xf32>, vector<16x128xf32> -> vector<16x128xf32>
    %c0_3 = arith.constant 0 : index
    %c0_4 = arith.constant 0 : index
    %3 = vector.load %arg2[%c0_3, %c0_4] : memref<1x128xf32, #tpu.memory_space<vmem>>, vector<1x128xf32>
    %4 = vector.broadcast %3 : vector<1x128xf32> to vector<16x128xf32>
    %5 = arith.addf %2, %4 : vector<16x128xf32>
    %c0_5 = arith.constant 0 : index
    %c0_6 = arith.constant 0 : index
    %6 = vector.load %arg3[%c0_5, %c0_6] : memref<16x128xf32, #tpu.memory_space<vmem>>, vector<16x128xf32>
    tpu.vector_store %arg3[%c0_5, %c0_6], %5 {strides = array<i32>} : memref<16x128xf32, #tpu.memory_space<vmem>>, vector<16x128xf32>,
    return
  }
}

module attributes {stable_mosaic.version = 11 : i64} {
  func.func @lstm_layer_kernel(%arg0: memref<8x2x128xf32, #tpu.memory_space<vmem>>, %arg1: memref<32x128xf32, #tpu.memory_space<vmem>>, %arg2: memref<8x2x32xf32, #tpu.memory_space<vmem>>, %arg3: memref<2x32xf32, #tpu.memory_space<vmem>>, %arg4: memref<2x32xf32, #tpu.memory_space<vmem>>) attributes {dimension_semantics = [], scalar_prefetch = 0 : i64, scratch_operands = 0 : i64, tpu.core_type = #tpu.core_type<tc>} {
    %cst = arith.constant 0.000000e+00 : f32
    %0 = vector.broadcast %cst : f32 to vector<2x32xf32>
    %c0 = arith.constant 0 : index
    %c0_0 = arith.constant 0 : index
    %1 = vector.load %arg3[%c0, %c0_0] : memref<2x32xf32, #tpu.memory_space<vmem>>, vector<2x32xf32>
    tpu.vector_store %arg3[%c0, %c0_0], %0 {strides = array<i32>} : memref<2x32xf32, #tpu.memory_space<vmem>>, vector<2x32xf32>,
    %cst_1 = arith.constant 0.000000e+00 : f32
    %2 = vector.broadcast %cst_1 : f32 to vector<2x32xf32>
    %c0_2 = arith.constant 0 : index
    %c0_3 = arith.constant 0 : index
    %3 = vector.load %arg4[%c0_2, %c0_3] : memref<2x32xf32, #tpu.memory_space<vmem>>, vector<2x32xf32>
    tpu.vector_store %arg4[%c0_2, %c0_3], %2 {strides = array<i32>} : memref<2x32xf32, #tpu.memory_space<vmem>>, vector<2x32xf32>,
    %c0_4 = arith.constant 0 : index
    %c0_5 = arith.constant 0 : index
    %4 = vector.load %arg1[%c0_4, %c0_5] : memref<32x128xf32, #tpu.memory_space<vmem>>, vector<32x128xf32>
    %c0_i32 = arith.constant 0 : i32
    %c8_i32 = arith.constant 8 : i32
    %5 = arith.addi %c0_i32, %c8_i32 : i32
    %c1_i32 = arith.constant 1 : i32
    scf.for %arg5 = %c0_i32 to %5 step %c1_i32  : i32 {
      %c1_i32_7 = arith.constant 1 : i32
      %6 = arith.muli %arg5, %c1_i32_7 : i32
      %c0_i32_8 = arith.constant 0 : i32
      %7 = arith.addi %c0_i32_8, %6 : i32
      %c0_9 = arith.constant 0 : index
      %c0_10 = arith.constant 0 : index
      %8 = vector.load %arg3[%c0_9, %c0_10] : memref<2x32xf32, #tpu.memory_space<vmem>>, vector<2x32xf32>
      %c0_11 = arith.constant 0 : index
      %c0_12 = arith.constant 0 : index
      %9 = vector.load %arg4[%c0_11, %c0_12] : memref<2x32xf32, #tpu.memory_space<vmem>>, vector<2x32xf32>
      %10 = arith.index_cast %7 : i32 to index
      %c0_13 = arith.constant 0 : index
      %c0_14 = arith.constant 0 : index
      %11 = vector.load %arg0[%10, %c0_13, %c0_14] : memref<8x2x128xf32, #tpu.memory_space<vmem>>, vector<1x2x128xf32>
      %12 = vector.shape_cast %11 : vector<1x2x128xf32> to vector<2x128xf32>
      %cst_15 = arith.constant dense<0.000000e+00> : vector<2x128xf32>
      %13 = tpu.matmul %8, %4, %cst_15 {dimension_numbers = #tpu.dot_dimension_numbers<[1], [0], [0], [1], [0, 0, 1, 1], [], []>} : vector<2x32xf32>, vector<32x128xf32>, vector<2x128xf32> -> vector<2x128xf32>
      %14 = arith.addf %12, %13 : vector<2x128xf32>
      %15 = arith.negf %14 : vector<2x128xf32>
      %16 = math.exp %15 : vector<2x128xf32>
      %cst_16 = arith.constant 1.000000e+00 : f32
      %17 = vector.broadcast %cst_16 : f32 to vector<2x128xf32>
      %18 = arith.addf %17, %16 : vector<2x128xf32>
      %19 = arith.divf %17, %18 : vector<2x128xf32>
      %20 = math.tanh %14 : vector<2x128xf32>
      %21 = vector.extract_strided_slice %19 {offsets = [0, 0], sizes = [2, 32], strides = [1, 1]} : vector<2x128xf32> to vector<2x32xf32>
      %22 = vector.extract_strided_slice %19 {offsets = [0, 32], sizes = [2, 32], strides = [1, 1]} : vector<2x128xf32> to vector<2x32xf32>
      %23 = vector.extract_strided_slice %20 {offsets = [0, 64], sizes = [2, 32], strides = [1, 1]} : vector<2x128xf32> to vector<2x32xf32>
      %24 = vector.extract_strided_slice %19 {offsets = [0, 96], sizes = [2, 32], strides = [1, 1]} : vector<2x128xf32> to vector<2x32xf32>
      %25 = arith.mulf %22, %9 : vector<2x32xf32>
      %26 = arith.mulf %21, %23 : vector<2x32xf32>
      %27 = arith.addf %25, %26 : vector<2x32xf32>
      %28 = math.tanh %27 : vector<2x32xf32>
      %29 = arith.mulf %24, %28 : vector<2x32xf32>
      %c0_17 = arith.constant 0 : index
      %c0_18 = arith.constant 0 : index
      %30 = vector.load %arg3[%c0_17, %c0_18] : memref<2x32xf32, #tpu.memory_space<vmem>>, vector<2x32xf32>
      tpu.vector_store %arg3[%c0_17, %c0_18], %29 {strides = array<i32>} : memref<2x32xf32, #tpu.memory_space<vmem>>, vector<2x32xf32>,
      %c0_19 = arith.constant 0 : index
      %c0_20 = arith.constant 0 : index
      %31 = vector.load %arg4[%c0_19, %c0_20] : memref<2x32xf32, #tpu.memory_space<vmem>>, vector<2x32xf32>
      tpu.vector_store %arg4[%c0_19, %c0_20], %27 {strides = array<i32>} : memref<2x32xf32, #tpu.memory_space<vmem>>, vector<2x32xf32>,
      %32 = arith.index_cast %7 : i32 to index
      %c0_21 = arith.constant 0 : index
      %c0_22 = arith.constant 0 : index
      %33 = vector.load %arg2[%32, %c0_21, %c0_22] : memref<8x2x32xf32, #tpu.memory_space<vmem>>, vector<1x2x32xf32>
      %34 = vector.shape_cast %33 : vector<1x2x32xf32> to vector<2x32xf32>
      %35 = vector.shape_cast %29 : vector<2x32xf32> to vector<1x2x32xf32>
      tpu.vector_store %arg2[%32, %c0_21, %c0_22], %35 {strides = array<i32>} : memref<8x2x32xf32, #tpu.memory_space<vmem>>, vector<1x2x32xf32>,
    }
    %c8_i32_6 = arith.constant 8 : i32
    return
  }
}

module attributes {stable_mosaic.version = 11 : i64} {
  func.func @lstm_last_layer_kernel(%arg0: memref<8x2x128xf32, #tpu.memory_space<vmem>>, %arg1: memref<32x128xf32, #tpu.memory_space<vmem>>, %arg2: memref<32x5xf32, #tpu.memory_space<vmem>>, %arg3: memref<1x5xf32, #tpu.memory_space<vmem>>, %arg4: memref<2x5xf32, #tpu.memory_space<vmem>>, %arg5: memref<2x32xf32, #tpu.memory_space<vmem>>, %arg6: memref<2x32xf32, #tpu.memory_space<vmem>>) attributes {dimension_semantics = [], scalar_prefetch = 0 : i64, scratch_operands = 0 : i64, tpu.core_type = #tpu.core_type<tc>} {
    %cst = arith.constant 0.000000e+00 : f32
    %0 = vector.broadcast %cst : f32 to vector<2x32xf32>
    %c0 = arith.constant 0 : index
    %c0_0 = arith.constant 0 : index
    %1 = vector.load %arg5[%c0, %c0_0] : memref<2x32xf32, #tpu.memory_space<vmem>>, vector<2x32xf32>
    tpu.vector_store %arg5[%c0, %c0_0], %0 {strides = array<i32>} : memref<2x32xf32, #tpu.memory_space<vmem>>, vector<2x32xf32>,
    %cst_1 = arith.constant 0.000000e+00 : f32
    %2 = vector.broadcast %cst_1 : f32 to vector<2x32xf32>
    %c0_2 = arith.constant 0 : index
    %c0_3 = arith.constant 0 : index
    %3 = vector.load %arg6[%c0_2, %c0_3] : memref<2x32xf32, #tpu.memory_space<vmem>>, vector<2x32xf32>
    tpu.vector_store %arg6[%c0_2, %c0_3], %2 {strides = array<i32>} : memref<2x32xf32, #tpu.memory_space<vmem>>, vector<2x32xf32>,
    %c0_4 = arith.constant 0 : index
    %c0_5 = arith.constant 0 : index
    %4 = vector.load %arg1[%c0_4, %c0_5] : memref<32x128xf32, #tpu.memory_space<vmem>>, vector<32x128xf32>
    %c0_i32 = arith.constant 0 : i32
    %c8_i32 = arith.constant 8 : i32
    %5 = arith.addi %c0_i32, %c8_i32 : i32
    %c1_i32 = arith.constant 1 : i32
    scf.for %arg7 = %c0_i32 to %5 step %c1_i32  : i32 {
      %c1_i32_16 = arith.constant 1 : i32
      %13 = arith.muli %arg7, %c1_i32_16 : i32
      %c0_i32_17 = arith.constant 0 : i32
      %14 = arith.addi %c0_i32_17, %13 : i32
      %c0_18 = arith.constant 0 : index
      %c0_19 = arith.constant 0 : index
      %15 = vector.load %arg5[%c0_18, %c0_19] : memref<2x32xf32, #tpu.memory_space<vmem>>, vector<2x32xf32>
      %c0_20 = arith.constant 0 : index
      %c0_21 = arith.constant 0 : index
      %16 = vector.load %arg6[%c0_20, %c0_21] : memref<2x32xf32, #tpu.memory_space<vmem>>, vector<2x32xf32>
      %17 = arith.index_cast %14 : i32 to index
      %c0_22 = arith.constant 0 : index
      %c0_23 = arith.constant 0 : index
      %18 = vector.load %arg0[%17, %c0_22, %c0_23] : memref<8x2x128xf32, #tpu.memory_space<vmem>>, vector<1x2x128xf32>
      %19 = vector.shape_cast %18 : vector<1x2x128xf32> to vector<2x128xf32>
      %cst_24 = arith.constant dense<0.000000e+00> : vector<2x128xf32>
      %20 = tpu.matmul %15, %4, %cst_24 {dimension_numbers = #tpu.dot_dimension_numbers<[1], [0], [0], [1], [0, 0, 1, 1], [], []>} : vector<2x32xf32>, vector<32x128xf32>, vector<2x128xf32> -> vector<2x128xf32>
      %21 = arith.addf %19, %20 : vector<2x128xf32>
      %22 = arith.negf %21 : vector<2x128xf32>
      %23 = math.exp %22 : vector<2x128xf32>
      %cst_25 = arith.constant 1.000000e+00 : f32
      %24 = vector.broadcast %cst_25 : f32 to vector<2x128xf32>
      %25 = arith.addf %24, %23 : vector<2x128xf32>
      %26 = arith.divf %24, %25 : vector<2x128xf32>
      %27 = math.tanh %21 : vector<2x128xf32>
      %28 = vector.extract_strided_slice %26 {offsets = [0, 0], sizes = [2, 32], strides = [1, 1]} : vector<2x128xf32> to vector<2x32xf32>
      %29 = vector.extract_strided_slice %26 {offsets = [0, 32], sizes = [2, 32], strides = [1, 1]} : vector<2x128xf32> to vector<2x32xf32>
      %30 = vector.extract_strided_slice %27 {offsets = [0, 64], sizes = [2, 32], strides = [1, 1]} : vector<2x128xf32> to vector<2x32xf32>
      %31 = vector.extract_strided_slice %26 {offsets = [0, 96], sizes = [2, 32], strides = [1, 1]} : vector<2x128xf32> to vector<2x32xf32>
      %32 = arith.mulf %29, %16 : vector<2x32xf32>
      %33 = arith.mulf %28, %30 : vector<2x32xf32>
      %34 = arith.addf %32, %33 : vector<2x32xf32>
      %35 = math.tanh %34 : vector<2x32xf32>
      %36 = arith.mulf %31, %35 : vector<2x32xf32>
      %c0_26 = arith.constant 0 : index
      %c0_27 = arith.constant 0 : index
      %37 = vector.load %arg5[%c0_26, %c0_27] : memref<2x32xf32, #tpu.memory_space<vmem>>, vector<2x32xf32>
      tpu.vector_store %arg5[%c0_26, %c0_27], %36 {strides = array<i32>} : memref<2x32xf32, #tpu.memory_space<vmem>>, vector<2x32xf32>,
      %c0_28 = arith.constant 0 : index
      %c0_29 = arith.constant 0 : index
      %38 = vector.load %arg6[%c0_28, %c0_29] : memref<2x32xf32, #tpu.memory_space<vmem>>, vector<2x32xf32>
      tpu.vector_store %arg6[%c0_28, %c0_29], %34 {strides = array<i32>} : memref<2x32xf32, #tpu.memory_space<vmem>>, vector<2x32xf32>,
    }
    %c8_i32_6 = arith.constant 8 : i32
    %c0_7 = arith.constant 0 : index
    %c0_8 = arith.constant 0 : index
    %6 = vector.load %arg5[%c0_7, %c0_8] : memref<2x32xf32, #tpu.memory_space<vmem>>, vector<2x32xf32>
    %c0_9 = arith.constant 0 : index
    %c0_10 = arith.constant 0 : index
    %7 = vector.load %arg2[%c0_9, %c0_10] : memref<32x5xf32, #tpu.memory_space<vmem>>, vector<32x5xf32>
    %cst_11 = arith.constant dense<0.000000e+00> : vector<2x5xf32>
    %8 = tpu.matmul %6, %7, %cst_11 {dimension_numbers = #tpu.dot_dimension_numbers<[1], [0], [0], [1], [0, 0, 1, 1], [], []>} : vector<2x32xf32>, vector<32x5xf32>, vector<2x5xf32> -> vector<2x5xf32>
    %c0_12 = arith.constant 0 : index
    %c0_13 = arith.constant 0 : index
    %9 = vector.load %arg3[%c0_12, %c0_13] : memref<1x5xf32, #tpu.memory_space<vmem>>, vector<1x5xf32>
    %10 = vector.broadcast %9 : vector<1x5xf32> to vector<2x5xf32>
    %11 = arith.addf %8, %10 : vector<2x5xf32>
    %c0_14 = arith.constant 0 : index
    %c0_15 = arith.constant 0 : index
    %12 = vector.load %arg4[%c0_14, %c0_15] : memref<2x5xf32, #tpu.memory_space<vmem>>, vector<2x5xf32>
    tpu.vector_store %arg4[%c0_14, %c0_15], %11 {strides = array<i32>} : memref<2x5xf32, #tpu.memory_space<vmem>>, vector<2x5xf32>,
    return
  }
}

</mosaic_0001>

<bundles_post_ra>
// kernel: lstm_forward.6
= control target key start
LH: loop header
LB: loop body
LE: loop exit
PB: predicated region body
PF: predicated region fallthrough
CT: control target
= control target key end

     0   :  { %8 = vsyncpa [#allocation3], 0  ;;  %s113_s15 = smov [#allocation2]   ;;  %s114_s17 = smov 128   ;;  %s154_s0 = inlined_call_operand.vmem [shape: f32[16,32], index: 0, kind: input, shape index: {}]   ;;  %s155_s1 = inlined_call_operand.hbm [shape: f32[32,128], index: 1, kind: input, shape index: {}]   ;;  %s156_s2 = inlined_call_operand.vmem [shape: f32[1,128], index: 2, kind: input, shape index: {}]   ;;  %s157_s3 = inlined_call_operand.vmem [shape: f32[16,128], index: 3, kind: output, shape index: {}]  }
   0x1   :  { %s15_s14 = sshll.u32 %s155_s1, 4  ;;  %s17_s16 = sshll.u32 %s113_s15, 4  ;;  %s16_s14 = int_to_ptr.hbm [resolvable:$true] %s15_s14  ;;  %s18_s16 = int_to_ptr.vmem [resolvable:$true] %s17_s16 }
   0x2   :  { %s115_s18 = smov 8  }
   0x3   :  { %23 = dma.hbm_to_vmem [thread:$0]  %s16_s14, 512, %s18_s16, [#allocation3], %s114_s17, %s114_s17, %s115_s18  }
   0x4   :  { %111 = dma.done.wait [#allocation3], 512  }
   0x5   :  { %112 = vsyncadd [#allocation3], 4294966784  ;;  %v35_v0 = vld [vmem:[#allocation2 + $0x18] sm:$0xff]  ;;  %v34_v1 = vld [vmem:[#allocation2 + $0x10] sm:$0xff]  ;;  %vm40_vm0 = vcmask 261120  }
   0x6   :  { %59 = vmatpush.msra.mxu0 %v35_v0  ;;  %79 = vmatpush.msra.mxu1 %v35_v0  ;;  %v33_v2 = vld [vmem:[#allocation2 + $0x8] sm:$0xff]  ;;  %v32_v3 = vld [vmem:[#allocation2] sm:$0xff] }
   0x7   :  { %v30_v4 = vld [vmem:[%s154_s0] sm:$0xff]  ;;  %v31_v5 = vld [vmem:[%s154_s0 + $0x8] sm:$0xff] }
   0x8   :  { %60 = vmatpush.msra.mxu0 %v34_v1  ;;  %80 = vmatpush.msra.mxu1 %v34_v1  ;;  %v86_v6 = vld [vmem:[%s156_s2] ss:$0 sm:$0xff] }
   0xa   :  { %61 = vmatpush.msra.mxu0 %v33_v2  ;;  %81 = vmatpush.msra.mxu1 %v33_v2 }
   0xc   :  { %62 = vmatpush.msra.mxu0 %v32_v3  ;;  %82 = vmatpush.msra.mxu1 %v32_v3 }
   0xd   :  { %77 = vmatmul.msk.f32.vlgmr.msra.gmra.mxu0 %vm40_vm0, %v30_v4  ;;  %78 = vmatmul.msk.f32.vlgmr.msra.gmra.mxu1 %vm40_vm0, %v31_v5 }
  0x8a   :  { %v64_v7 = vpop.f32.mrf.mxu0  ;;  %v67_v8 = vpop.f32.mrf.mxu1 }
  0x8b   :  { %v65_v9 = vadd.f32 %v86_v6, %v64_v7  ;;  %v68_v10 = vadd.f32 %v86_v6, %v67_v8 }
  0x8d   :  { %70 = vst [vmem:[%s157_s3] sm:$0xff] %v65_v9 }
  0x8e   :  { %71 = vst [vmem:[%s157_s3 + $0x8] sm:$0xff] %v68_v10 }
  0x8f   :  { %76 = vsyncpa [#allocation3], 1 }

// kernel: lstm_forward.4
= control target key start
LH: loop header
LB: loop body
LE: loop exit
PB: predicated region body
PF: predicated region fallthrough
CT: control target
= control target key end

     0   :  { %8 = vsyncpa [#allocation3], 0  ;;  %s109_s15 = smov [#allocation2]   ;;  %s110_s17 = smov 128   ;;  %s150_s0 = inlined_call_operand.vmem [shape: f32[16,16], index: 0, kind: input, shape index: {}]   ;;  %s151_s1 = inlined_call_operand.hbm [shape: f32[16,128], index: 1, kind: input, shape index: {}]   ;;  %s152_s2 = inlined_call_operand.vmem [shape: f32[1,128], index: 2, kind: input, shape index: {}]   ;;  %s153_s3 = inlined_call_operand.vmem [shape: f32[16,128], index: 3, kind: output, shape index: {}]  }
   0x1   :  { %s15_s14 = sshll.u32 %s151_s1, 4  ;;  %s17_s16 = sshll.u32 %s109_s15, 4  ;;  %s16_s14 = int_to_ptr.hbm [resolvable:$true] %s15_s14  ;;  %s18_s16 = int_to_ptr.vmem [resolvable:$true] %s17_s16 }
   0x2   :  { %s111_s18 = smov 8  }
   0x3   :  { %23 = dma.hbm_to_vmem [thread:$0]  %s16_s14, 256, %s18_s16, [#allocation3], %s110_s17, %s110_s17, %s111_s18  }
   0x4   :  { %107 = dma.done.wait [#allocation3], 256  }
   0x5   :  { %108 = vsyncadd [#allocation3], 4294967040  ;;  %v33_v0 = vld [vmem:[#allocation2 + $0x8] sm:$0xff]  ;;  %v32_v1 = vld [vmem:[#allocation2] sm:$0xff]  ;;  %vm38_vm0 = vcmask 130048  }
   0x6   :  { %59 = vmatpush.msra.mxu0 %v33_v0  ;;  %77 = vmatpush.msra.mxu1 %v33_v0  ;;  %v30_v2 = vld [vmem:[%s150_s0] sm:$0xff]  ;;  %v31_v3 = vld [vmem:[%s150_s0 + $0x8] sm:$0xff] }
   0x7   :  { %v82_v4 = vld [vmem:[%s152_s2] ss:$0 sm:$0xff] }
   0x8   :  { %60 = vmatpush.msra.mxu0 %v32_v1  ;;  %78 = vmatpush.msra.mxu1 %v32_v1 }
   0x9   :  { %75 = vmatmul.msk.f32.vlgmr.msra.gmra.mxu0 %vm38_vm0, %v30_v2  ;;  %76 = vmatmul.msk.f32.vlgmr.msra.gmra.mxu1 %vm38_vm0, %v31_v3 }
  0x86   :  { %v62_v5 = vpop.f32.mrf.mxu0  ;;  %v65_v6 = vpop.f32.mrf.mxu1 }
  0x87   :  { %v63_v7 = vadd.f32 %v82_v4, %v62_v5  ;;  %v66_v8 = vadd.f32 %v82_v4, %v65_v6 }
  0x89   :  { %68 = vst [vmem:[%s153_s3] sm:$0xff] %v63_v7 }
  0x8a   :  { %69 = vst [vmem:[%s153_s3 + $0x8] sm:$0xff] %v66_v8 }
  0x8b   :  { %74 = vsyncpa [#allocation3], 1 }

// kernel: lstm_forward.5
= control target key start
LH: loop header
LB: loop body
LE: loop exit
PB: predicated region body
PF: predicated region fallthrough
CT: control target
= control target key end

     0   :  { %vm14_vm0 = vcmask 254976   ;;  %v162_v0 = vmov 0.0   ;;  %s219_s27 = smov 0   ;;  %s262_s0 = inlined_call_operand.vmem [shape: f32[8,2,128], index: 0, kind: input, shape index: {}]   ;;  %s263_s1 = inlined_call_operand.vmem [shape: f32[32,128], index: 1, kind: input, shape index: {}]   ;;  %s264_s2 = inlined_call_operand.vmem [shape: f32[8,2,32], index: 2, kind: output, shape index: {0}]   ;;  %s265_s3 = inlined_call_operand.vmem [shape: f32[2,32], index: 3, kind: output, shape index: {1}]   ;;  %s266_s4 = inlined_call_operand.vmem [shape: f32[2,32], index: 4, kind: output, shape index: {2}]  }
   0x1   :  { %15 = vst.msk [vmem:[%s265_s3] sm:$0x3] %vm14_vm0, %v162_v0  ;;  %v198_v1 = vld [vmem:[%s263_s1] sm:$0xff]  ;;  %v203_v2 = vld [vmem:[%s263_s1 + $0x8] sm:$0xff]  ;;  %v208_v3 = vld [vmem:[%s263_s1 + $0x10] sm:$0xff] }
   0x2   :  { %16 = vst.msk [vmem:[%s266_s4] sm:$0x3] %vm14_vm0, %v162_v0  ;;  %v217_v4 = vld [vmem:[%s263_s1 + $0x18] sm:$0xff] }
   0x3 LB: > { %48 = vmatpush.msra.mxu0 %v217_v4  ;;  %vm32_vm1 = vcmask 261120   ;;  %s131_s1 = sshll.u32 %s160_s27, 1  ;;  %s163_s7 = smov 64   ;;  %s160_s27 = sphi %s219_s27, %s26_s27  }
   0x4   : > { %s30_s6 = scalar_lea.vmem %s262_s0, %s131_s1  ;;  %s164_s10 = smov 32  }
   0x5   : > { %49 = vmatpush.msra.mxu0 %v208_v3  ;;  %v31_v6 = vld [vmem:[%s30_s6] sm:$0x3]  ;;  %s165_s11 = smov 96   ;;  %s108_s14 = scalar_lea.vmem %s264_s2, %s131_s1 }
   0x6   : > { %s26_s27 = sadd.s32 1, %s160_s27  }
   0x7   : > { %50 = vmatpush.msra.mxu0 %v203_v2  ;;  %p23_p0 = scmp.ge.s32.totalorder %s26_s27, 8  }
   0x8   : > { %v27_v5 = vld [vmem:[%s265_s3] sm:$0x3] }
   0x9   : > { %51 = vmatpush.msra.mxu0 %v198_v1  ;;  %v28_v10 = vld [vmem:[%s266_s4] sm:$0x3] }
   0xa   : > { %132 = vmatmul.msk.f32.vlgmr.msra.gmra.mxu0 %vm32_vm1, %v27_v5 }
  0x87   : > { %v53_v7 = vpop.f32.mrf.mxu0 }
  0x88   : > { %v56_v8 = vadd.f32 %v53_v7, %v31_v6 }
  0x8a   : > { %146 = vtanh.f32 %v56_v8  ;;  %v133_v11 = vmul.f32 -1.442695, %v56_v8 }
  0x8c   : > { %148 = vpow2.f32 %v133_v11 }
  0x90   : > { %v147_v9 = vpop.eup %146 }
  0x91   : > { %83 = vrot.lane.b32.xlu0 %v147_v9, %s163_s7 }
  0x92   : > { %v149_v12 = vpop.eup %148 }
  0x93   : > { %v60_v13 = vadd.f32 1.0, %v149_v12 }
  0x95   : > { %150 = vrcp.f32 %v60_v13  ;;  %v72_v19 = vand.u32 2147483648, %v60_v13  ;;  %vm66_vm3 = vweird.f32 %v60_v13  ;;  %v70_v20 = vand.u32 2147483647, %v60_v13 }
  0x97   : > { %v73_v22 = vor.u32 1.1754944e-38, %v72_v19  ;;  %vm71_vm5 = vcmp.eq.f32.partialorder %v70_v20, 8.507059e+37 }
  0x99   : > { %78 = vrot.lane.b32.xlu0 %v28_v10, %s164_s10 }
  0x9b   : > { %v151_v14 = vpop.eup %150 }
  0x9c   : > { %v62_v15 = vmul.f32 %v151_v14, %v60_v13  ;;  %vm67_vm2 = vweird.f32 %v151_v14 }
  0x9d   : > { %vm68_vm4 = vmor %vm66_vm3, %vm67_vm2 }
  0x9e   : > { %v63_v16 = vsub.f32 1.0, %v62_v15 }
  0xa0   : > { %v64_v17 = vmul.f32 %v151_v14, %v63_v16 }
  0xa2   : > { %v65_v18 = vadd.f32 %v151_v14, %v64_v17 }
  0xa4   : > { %v69_v21 = vsel %vm68_vm4, %v151_v14, %v65_v18 }
  0xa5   : > { %v74_v24 = vsel %vm71_vm5, %v73_v22, %v69_v21 }
 0x103   : > { %v84_v23 = vpop.permute.xlu0 %83 }
 0x104   : > { %v86_v25 = vmul.f32 %v84_v23, %v74_v24 }
 0x106   : > { %88 = vrot.lane.b32.xlu1 %v86_v25, %s164_s10 }
 0x10b   : > { %v79_v26 = vpop.permute.xlu0 %78 }
 0x10c   : > { %v81_v27 = vmul.f32 %v79_v26, %v74_v24 }
 0x178   : > { %v89_v28 = vpop.permute.xlu1 %88 }
 0x179   : > { %v91_v29 = vadd.f32 %v89_v28, %v81_v27 }
 0x17b   : > { %152 = vtanh.f32 %v91_v29 }
 0x181   : > { %v153_v30 = vpop.eup %152 }
 0x182   : > { %94 = vrot.lane.b32.xlu1 %v153_v30, %s163_s7 }
 0x1f4   : > { %v95_v31 = vpop.permute.xlu1 %94 }
 0x1f5   : > { %v97_v32 = vmul.f32 %v95_v31, %v74_v24 }
 0x1f7   : > { %99 = vrot.lane.b32.xlu2 %v97_v32, %s164_s10 }
 0x1ff   : > { %104 = vrot.lane.b32.xlu2 %v91_v29, %s165_s11 }
 0x251   : > { %v100_v33 = vpop.permute.xlu2 %99 }
 0x252   : > { %102 = vst.msk [vmem:[%s265_s3] sm:$0x3] %vm14_vm0, %v100_v33 }
 0x253   : > { %109 = vst.msk [vmem:[%s108_s14] sm:$0x3] %vm14_vm0, %v100_v33 }
 0x256   :  { %25 = sbr.rel (!%p23_p0) target bundleno = 3 (0x3), region = 53 }
 0x259   : > { %v105_v34 = vpop.permute.xlu2 %104 }
 0x25a   : > { %107 = vst.msk [vmem:[%s266_s4] sm:$0x3] %vm14_vm0, %v105_v34 }

// kernel: lstm_forward.7
= control target key start
LH: loop header
LB: loop body
LE: loop exit
PB: predicated region body
PF: predicated region fallthrough
CT: control target
= control target key end

     0   :  { %12 = vsyncpa [#allocation3], 0  ;;  %vm21_vm0 = vcmask 254976   ;;  %v241_v2 = vmov 0.0   ;;  %s309_s9 = smov 0   ;;  %s367_s0 = inlined_call_operand.vmem [shape: f32[8,2,128], index: 0, kind: input, shape index: {}]   ;;  %s368_s1 = inlined_call_operand.vmem [shape: f32[32,128], index: 1, kind: input, shape index: {}]   ;;  %s369_s2 = inlined_call_operand.vmem [shape: f32[32,5], index: 2, kind: input, shape index: {}]   ;;  %s370_s3 = inlined_call_operand.vmem [shape: f32[1,5], index: 3, kind: input, shape index: {}]   ;;  %s371_s4 = inlined_call_operand.hbm [shape: f32[2,5], index: 4, kind: output, shape index: {0}]   ;;  %s372_s5 = inlined_call_operand.vmem [shape: f32[2,32], index: 5, kind: output, shape index: {1}]   ;;  %s373_s6 = inlined_call_operand.vmem [shape: f32[2,32], index: 6, kind: output, shape index: {2}]  }
   0x1   :  { %v284_v0 = vld [vmem:[%s368_s1] sm:$0xff]  ;;  %v289_v1 = vld [vmem:[%s368_s1 + $0x8] sm:$0xff]  ;;  %22 = vst.msk [vmem:[%s372_s5] sm:$0x3] %vm21_vm0, %v241_v2  ;;  %v298_v3 = vld [vmem:[%s368_s1 + $0x10] sm:$0xff] }
   0x2   :  { %v303_v4 = vld [vmem:[%s368_s1 + $0x18] sm:$0xff]  ;;  %23 = vst.msk [vmem:[%s373_s6] sm:$0x3] %vm21_vm0, %v241_v2 }
   0x3 LB: > { %55 = vmatpush.msra.mxu0 %v303_v4  ;;  %vm39_vm1 = vcmask 261120   ;;  %s181_s11 = sshll.u32 %s239_s9, 1  ;;  %s242_s15 = smov 64   ;;  %s239_s9 = sphi %s309_s9, %s33_s9  }
   0x4   : > { %s37_s14 = scalar_lea.vmem %s367_s0, %s181_s11  ;;  %s243_s18 = smov 32  }
   0x5   : > { %56 = vmatpush.msra.mxu0 %v298_v3  ;;  %v38_v6 = vld [vmem:[%s37_s14] sm:$0x3]  ;;  %s244_s19 = smov 96   ;;  %s33_s9 = sadd.s32 1, %s239_s9  }
   0x6   : > { %p30_p0 = scmp.ge.s32.totalorder %s33_s9, 8  }
   0x7   : > { %57 = vmatpush.msra.mxu0 %v289_v1  ;;  %v119_v35 = vld [vmem:[%s369_s2 + $0x18] sm:$0xff] (%p30_p0)  ;;  %v118_v36 = vld [vmem:[%s369_s2 + $0x10] sm:$0xff] (%p30_p0)  ;;  %v117_v37 = vld [vmem:[%s369_s2 + $0x8] sm:$0xff] (%p30_p0)  ;;  %s245_s1 = smov (%p30_p0), [#allocation2]   ;;  %s157_s13 = sshll.u32 (%p30_p0), %s371_s4, 4  ;;  %vm148_vm6 = vcmask (%p30_p0), 33792   ;;  %s158_s13 = int_to_ptr.hbm [resolvable:$true] %s157_s13 }
   0x8   : > { %v34_v5 = vld [vmem:[%s372_s5] sm:$0x3]  ;;  %s155_s10 = sshll.u32 (%p30_p0), %s245_s1, 4  ;;  %s156_s10 = int_to_ptr.vmem [resolvable:$true] %s155_s10 }
   0x9   : > { %58 = vmatpush.msra.mxu0 %v284_v0  ;;  %v35_v10 = vld [vmem:[%s373_s6] sm:$0x3] }
   0xa   : > { %182 = vmatmul.msk.f32.vlgmr.msra.gmra.mxu0 %vm39_vm1, %v34_v5  ;;  %v116_v38 = vld [vmem:[%s369_s2] sm:$0xff] (%p30_p0) }
   0xb   :  { %140 = vmatpush.msra.mxu0 (%p30_p0), %v119_v35  ;;  %v206_v40 = vld [vmem:[%s370_s3] ss:$0 sm:$0xff] (%p30_p0) }
   0xd   :  { %141 = vmatpush.msra.mxu0 (%p30_p0), %v118_v36 }
   0xf   :  { %142 = vmatpush.msra.mxu0 (%p30_p0), %v117_v37 }
  0x11   :  { %143 = vmatpush.msra.mxu0 (%p30_p0), %v116_v38 }
  0x87   : > { %v60_v7 = vpop.f32.mrf.mxu0 }
  0x88   : > { %v63_v8 = vadd.f32 %v60_v7, %v38_v6 }
  0x8a   : > { %198 = vtanh.f32 %v63_v8  ;;  %v183_v11 = vmul.f32 -1.442695, %v63_v8 }
  0x8c   : > { %200 = vpow2.f32 %v183_v11 }
  0x90   : > { %v199_v9 = vpop.eup %198 }
  0x91   : > { %90 = vrot.lane.b32.xlu0 %v199_v9, %s242_s15 }
  0x92   : > { %v201_v12 = vpop.eup %200 }
  0x93   : > { %v67_v13 = vadd.f32 1.0, %v201_v12 }
  0x95   : > { %202 = vrcp.f32 %v67_v13  ;;  %v79_v19 = vand.u32 2147483648, %v67_v13  ;;  %vm73_vm3 = vweird.f32 %v67_v13  ;;  %v77_v20 = vand.u32 2147483647, %v67_v13 }
  0x97   : > { %v80_v22 = vor.u32 1.1754944e-38, %v79_v19  ;;  %vm78_vm5 = vcmp.eq.f32.partialorder %v77_v20, 8.507059e+37 }
  0x99   : > { %85 = vrot.lane.b32.xlu0 %v35_v10, %s243_s18 }
  0x9b   : > { %v203_v14 = vpop.eup %202 }
  0x9c   : > { %v69_v15 = vmul.f32 %v203_v14, %v67_v13  ;;  %vm74_vm2 = vweird.f32 %v203_v14 }
  0x9d   : > { %vm75_vm4 = vmor %vm73_vm3, %vm74_vm2 }
  0x9e   : > { %v70_v16 = vsub.f32 1.0, %v69_v15 }
  0xa0   : > { %v71_v17 = vmul.f32 %v203_v14, %v70_v16 }
  0xa2   : > { %v72_v18 = vadd.f32 %v203_v14, %v71_v17 }
  0xa4   : > { %v76_v21 = vsel %vm75_vm4, %v203_v14, %v72_v18 }
  0xa5   : > { %v81_v24 = vsel %vm78_vm5, %v80_v22, %v76_v21 }
 0x103   : > { %v91_v23 = vpop.permute.xlu0 %90 }
 0x104   : > { %v93_v25 = vmul.f32 %v91_v23, %v81_v24 }
 0x106   : > { %95 = vrot.lane.b32.xlu1 %v93_v25, %s243_s18 }
 0x10b   : > { %v86_v26 = vpop.permute.xlu0 %85 }
 0x10c   : > { %v88_v27 = vmul.f32 %v86_v26, %v81_v24 }
 0x178   : > { %v96_v28 = vpop.permute.xlu1 %95 }
 0x179   : > { %v98_v29 = vadd.f32 %v96_v28, %v88_v27 }
 0x17b   : > { %204 = vtanh.f32 %v98_v29 }
 0x181   : > { %v205_v30 = vpop.eup %204 }
 0x182   : > { %101 = vrot.lane.b32.xlu1 %v205_v30, %s242_s15 }
 0x1f4   : > { %v102_v31 = vpop.permute.xlu1 %101 }
 0x1f5   : > { %v104_v32 = vmul.f32 %v102_v31, %v81_v24 }
 0x1f7   : > { %106 = vrot.lane.b32.xlu2 %v104_v32, %s243_s18 }
 0x1ff   : > { %111 = vrot.lane.b32.xlu2 %v98_v29, %s244_s19 }
 0x251   : > { %v107_v33 = vpop.permute.xlu2 %106 }
 0x252   : > { %109 = vst.msk [vmem:[%s372_s5] sm:$0x3] %vm21_vm0, %v107_v33 }
 0x256   :  { %32 = sbr.rel (!%p30_p0) target bundleno = 3 (0x3), region = 60 }
 0x259   : > { %v112_v34 = vpop.permute.xlu2 %111  ;;  %v115_v39 = vld [vmem:[%s372_s5] sm:$0x3] (%p30_p0) }
 0x25a   : > { %114 = vst.msk [vmem:[%s373_s6] sm:$0x3] %vm21_vm0, %v112_v34  ;;  %184 = vmatmul.msk.f32.vlgmr.msra.gmra.mxu0 (%p30_p0), %vm39_vm1, %v115_v39 }
 0x2d7   :  { %v145_v41 = vpop.f32.mrf.mxu0 }
 0x2d8   :  { %v146_v42 = vadd.f32 %v206_v40, %v145_v41 }
 0x2da   :  { %149 = vst.msk [vmem:[#allocation2] sm:$0x3] %vm148_vm6, %v146_v42 }
 0x2db   :  { %160 = dma.vmem_to_hbm [thread:$0]  %s156_s10, 32, %s158_s13, [#allocation3]  }
 0x2dc   :  { %235 = dma.done.wait [#allocation3], 32  }
 0x2dd   :  { %236 = vsyncadd [#allocation3], 4294967264 }
 0x2de   :  { %173 = vsyncpa [#allocation3], 1 }

</bundles_post_ra>
